<compile_context>
chip_gen: v5e
topology: v5e:2x2
jax: 0.10.0
libtpu: 0.0.40
codegen_flags: <defaults>
</compile_context>

<pallas_src>
import functools
from typing import NamedTuple

import jax
import jax.numpy as jnp
from jax import lax
from jax.experimental import pallas as pl
from jax.experimental.pallas import tpu as pltpu


def _cdiv(a, b):
    return -(-a // b)


def _round_up(x, m):
    return ((x + m - 1) // m) * m


def _gather_slab_kernel(cols_ref, t_hi_ref, t_mid_ref, out_ref, *, groups, tk):
    """Grid step (i, k): gather rows for tm*groups nodes from the k-th table tile.

    cols_ref : (tm, groups) int32 -- combined row index per node; group g writes output
               lanes [g*E_lane, (g+1)*E_lane).
    t_*_ref  : (tk, E_lane) bf16  -- hi / mid planes of the k-th tile of the combined
               table (hi + mid reconstructs the f32 table to ~2^-18 relative).
    out_ref  : (tm, groups*E_lane) f32 -- lane-dense output slab, accumulated across k.
    """
    k = pl.program_id(1)

    @pl.when(k == 0)
    def _():
        out_ref[...] = jnp.zeros_like(out_ref)

    tm = out_ref.shape[0]
    base = k * tk
    j = lax.broadcasted_iota(jnp.int32, (tm, tk), 1)
    t_hi = t_hi_ref[...]
    t_mid = t_mid_ref[...]

    parts = []
    for g in range(groups):
        # Per-group one-hot restricted to this k-tile: rows outside [base, base+tk)
        # match nothing, so other k-steps contribute exactly zero.
        local = cols_ref[:, g:g + 1] - base                          # (tm, 1) i32
        # f32 compare/select, single bf16 cast (v5e has no bf16 VALU).
        oh = jnp.where(j == local, 1.0, 0.0).astype(jnp.bfloat16)    # (tm, tk)
        # Exact row gather on the MXU: one-hot * bf16 row is exact, accumulation is f32.
        acc = jnp.dot(oh, t_hi, preferred_element_type=jnp.float32)
        acc = acc + jnp.dot(oh, t_mid, preferred_element_type=jnp.float32)
        parts.append(acc)

    contrib = parts[0] if groups == 1 else jnp.concatenate(parts, axis=-1)
    out_ref[...] += contrib


class EmbedTables(NamedTuple):
    t_hi: jax.Array       # (R_pad, E_lane) bf16 -- high plane of combined projected table
    t_mid: jax.Array      # (R_pad, E_lane) bf16 -- residual plane
    seg_off: jax.Array    # (num_ntypes,) i32   -- row offset of each ntype's segment
    seg_rows: jax.Array   # (num_ntypes,) i32   -- valid rows per ntype (for clipping)
    has_feat: jax.Array   # (num_ntypes,) bool
    embed_size: int
    e_lane: int
    groups: int
    tk: int
    r_pad: int


def prepare_embed_tables(features, feat_weights, node_embed_weight, embed_size,
                         tk_max=512):
    """Batch-invariant preprocessing: project feature tables, build the combined table.

    Depends only on parameters/features (NOT on node_ids), so call once and reuse the
    result across forward passes.  `feat_weights` may be a dict keyed by ntype or a
    sequence indexed by ntype (only entries with features[t] is not None are accessed).
    """
    E = int(embed_size)
    num_ntypes = len(features)

    segments = []
    seg_offset = [0] * num_ntypes
    seg_rows = [0] * num_ntypes
    has_feat = [False] * num_ntypes
    r = 0
    for t, feat in enumerate(features):
        if feat is None:
            continue
        w_t = feat_weights[t]
        # Project each small feature TABLE once: rows_t x D_t x E flops, rows_t << N.
        segments.append(jnp.dot(feat.astype(jnp.float32), w_t.astype(jnp.float32),
                                precision=lax.Precision.HIGHEST))
        seg_offset[t] = r
        seg_rows[t] = int(feat.shape[0])
        has_feat[t] = True
        r += int(feat.shape[0])
    emb_offset = r
    emb_rows = int(node_embed_weight.shape[0])
    segments.append(node_embed_weight.astype(jnp.float32))
    r += emb_rows
    for t in range(num_ntypes):
        if not has_feat[t]:
            seg_offset[t] = emb_offset
            seg_rows[t] = emb_rows
    table = jnp.concatenate(segments, axis=0)                         # (R, E)
    R = r

    # Lane layout: pack G = 128 // E nodes per output row when possible; otherwise pad E
    # up to a 128 multiple so stores stay lane-dense.
    if E < 128 and 128 % E == 0:
        groups, e_lane = 128 // E, E
    else:
        groups, e_lane = 1, _round_up(E, 128)

    # k-tile size for streaming the table through VMEM (bounded residency for any R).
    tk = min(_round_up(tk_max, 8), _round_up(R, 8))
    r_pad = _round_up(R, tk)
    table_pad = jnp.zeros((r_pad, e_lane), jnp.float32).at[:R, :E].set(table)

    # 2-plane bf16 split: hi + mid == f32 table to ~2^-18 relative; the gather matmul
    # runs on the MXU's native bf16 path on every TPU generation.
    t_hi = table_pad.astype(jnp.bfloat16)
    t_mid = (table_pad - t_hi.astype(jnp.float32)).astype(jnp.bfloat16)

    return EmbedTables(t_hi, t_mid,
                       jnp.asarray(seg_offset, jnp.int32),
                       jnp.asarray(seg_rows, jnp.int32),
                       jnp.asarray(has_feat, jnp.bool_),
                       E, e_lane, groups, tk, r_pad)


def rel_graph_embed_lookup(tables, node_ids, node_tids, type_ids, tm_max=512):
    """Per-batch forward: one combined row index per node, lane-dense slab gather."""
    N = int(node_ids.shape[0])
    E, e_lane, G = tables.embed_size, tables.e_lane, tables.groups

    num_ntypes = int(tables.seg_off.shape[0])
    tid = jnp.clip(node_tids.astype(jnp.int32), 0, num_ntypes - 1)
    idx = jnp.where(tables.has_feat[tid],
                    type_ids.astype(jnp.int32), node_ids.astype(jnp.int32))
    idx = jnp.clip(idx, 0, tables.seg_rows[tid] - 1)   # guard dirty ids
    rows = tables.seg_off[tid] + idx                   # (N,) combined row index

    # Node tiling: large output tiles amortize the ~0.35us/grid-step overhead, but keep
    # >= 4 grid steps along the parallel axis so both v7x TensorCores get work.
    M = _cdiv(N, G)                                    # output slab rows
    tm = max(8, min(_round_up(tm_max, 8), _round_up(_cdiv(M, 4), 8)))
    M_pad = _round_up(M, tm)

    rows_pad = jnp.zeros((M_pad * G,), jnp.int32).at[:N].set(rows)
    cols = rows_pad.reshape(M_pad, G)                  # (M_pad, G)

    nk = tables.r_pad // tables.tk
    # VMEM per grid step (double-buffered): table planes 2 * 2 * tk * e_lane * 2B
    # (<= 512 KiB at tk=512, e_lane=128), cols 2 * tm * G * 4B, out 2 * tm * 128 * 4B --
    # bounded for any table size R, comfortably inside the default scoped VMEM on
    # v5e (16 MiB), v6e (32 MiB) and v7x (32 of 64 MiB).  (With nk == 1 the table blocks
    # are grid-invariant and a single-buffered pipeline_mode would halve them again, but
    # at <= 512 KiB that is not worth the extra spec plumbing.)
    kernel = functools.partial(_gather_slab_kernel, groups=G, tk=tables.tk)
    out_slab = pl.pallas_call(
        kernel,
        out_shape=jax.ShapeDtypeStruct((M_pad, G * e_lane), jnp.float32),
        grid=(M_pad // tm, nk),
        in_specs=[
            pl.BlockSpec((tm, G), lambda i, k: (i, 0)),
            pl.BlockSpec((tables.tk, e_lane), lambda i, k: (k, 0)),
            pl.BlockSpec((tables.tk, e_lane), lambda i, k: (k, 0)),
        ],
        out_specs=pl.BlockSpec((tm, G * e_lane), lambda i, k: (i, 0)),
        compiler_params=pltpu.CompilerParams(
            dimension_semantics=("parallel", "arbitrary")),
    )(cols, tables.t_hi, tables.t_mid)

    # (M_pad, G*E_lane) row-major is bit-identical to (M_pad*G, E_lane) row-major:
    # the reshape is free metadata plumbing.
    return out_slab.reshape(M_pad * G, e_lane)[:N, :E]


def rel_graph_embed_forward(node_ids, node_tids, type_ids, features,
                            feat_weights, node_embed_weight, embed_size):
    """One-shot convenience wrapper.  For repeated forward passes call
    prepare_embed_tables() once (it is batch-invariant) and reuse
    rel_graph_embed_lookup() per batch."""
    tables = prepare_embed_tables(features, feat_weights, node_embed_weight, embed_size)
    return rel_graph_embed_lookup(tables, node_ids, node_tids, type_ids)


if __name__ == "__main__":
    key = jax.random.PRNGKey(0)
    ks = jax.random.split(key, 8)

    # Small problem consistent with the module's __init__/forward.
    num_nodes = 64          # total nodes (embedding table rows)
    embed_size = 32         # output embed size E
    num_of_ntype = 3        # ntype 0: features, ntype 1: featureless, ntype 2: features
    N = 70                  # nodes queried; deliberately NOT a multiple of the tile

    # Per-ntype raw feature tables (ntype 1 is one-hot/featureless -> None).
    feat0 = jax.random.normal(ks[0], (10, 16), jnp.float32)   # 10 rows, D_0 = 16
    feat2 = jax.random.normal(ks[1], (12, 24), jnp.float32)   # 12 rows, D_2 = 24
    features = [feat0, None, feat2]

    # Deterministic parameter init (mirrors nn.init in __init__).
    def xavier_uniform(k, shape):
        limit = (6.0 / (shape[0] + shape[1])) ** 0.5
        return jax.random.uniform(k, shape, jnp.float32, -limit, limit)

    feat_weights = {
        0: xavier_uniform(ks[2], (16, embed_size)),
        2: xavier_uniform(ks[3], (24, embed_size)),
    }
    node_embed_weight = jax.random.uniform(
        ks[4], (num_nodes, embed_size), jnp.float32, -1.0, 1.0)

    # Forward inputs.
    node_ids = jax.random.randint(ks[5], (N,), 0, num_nodes, dtype=jnp.int32)
    node_tids = jax.random.randint(ks[6], (N,), 0, num_of_ntype, dtype=jnp.int32)
    rows_per_type = jnp.where(node_tids == 0, 10,
                              jnp.where(node_tids == 2, 12, num_nodes))
    type_ids = (jax.random.randint(ks[7], (N,), 0, 1_000_000, dtype=jnp.int32)
                % rows_per_type).astype(jnp.int32)

    # Table construction is hoisted (batch-invariant); only the lookup runs per batch.
    tables = prepare_embed_tables(features, feat_weights, node_embed_weight, embed_size)
    out = rel_graph_embed_lookup(tables, node_ids, node_tids, type_ids)
    out = jax.block_until_ready(out)

    # Pure-JAX reference (same semantics as the torch forward loop).
    ref = jnp.take(node_embed_weight, node_ids, axis=0)
    for t, feat in enumerate(features):
        if feat is None:
            continue
        idx = jnp.clip(type_ids, 0, feat.shape[0] - 1)
        proj = jnp.dot(jnp.take(feat, idx, axis=0), feat_weights[t],
                       precision=lax.Precision.HIGHEST)
        ref = jnp.where((node_tids == t)[:, None], proj, ref)

    assert out.shape == (N, embed_size)
    # hi+mid bf16 plane split reconstructs the f32 table to ~2^-18 relative.
    assert jnp.allclose(out, ref, atol=1e-4, rtol=1e-4), "mismatch vs reference"
    print("KERNEL_OK")
</pallas_src>

<mosaic_0001>
module attributes {stable_mosaic.version = 11 : i64} {
  func.func @_gather_slab_kernel(%arg0: i32, %arg1: i32, %arg2: memref<8x4xi32, #tpu.memory_space<vmem>>, %arg3: memref<88x32xbf16, #tpu.memory_space<vmem>>, %arg4: memref<88x32xbf16, #tpu.memory_space<vmem>>, %arg5: memref<8x128xf32, #tpu.memory_space<vmem>>) attributes {dimension_semantics = [#tpu.dimension_semantics<parallel>, #tpu.dimension_semantics<arbitrary>], iteration_bounds = array<i64: 3, 1>, scalar_prefetch = 0 : i64, scratch_operands = 0 : i64, tpu.core_type = #tpu.core_type<tc>, window_params = [{transform_indices = @transform_0, window_bounds = array<i64: 8, 4>}, {transform_indices = @transform_1, window_bounds = array<i64: 88, 32>}, {transform_indices = @transform_2, window_bounds = array<i64: 88, 32>}, {transform_indices = @transform_3, window_bounds = array<i64: 8, 128>}]} {
    %c0_i32 = arith.constant 0 : i32
    %0 = arith.cmpi eq, %arg1, %c0_i32 : i32
    %1 = arith.extui %0 : i1 to i32
    %c0_i32_0 = arith.constant 0 : i32
    %2 = arith.cmpi ne, %1, %c0_i32_0 : i32
    scf.if %2 {
      %cst_28 = arith.constant 0.000000e+00 : f32
      %59 = vector.broadcast %cst_28 : f32 to vector<8x128xf32>
      %c0_29 = arith.constant 0 : index
      %c0_30 = arith.constant 0 : index
      %60 = vector.load %arg5[%c0_29, %c0_30] : memref<8x128xf32, #tpu.memory_space<vmem>>, vector<8x128xf32>
      tpu.vector_store %arg5[%c0_29, %c0_30], %59 {strides = array<i32>} : memref<8x128xf32, #tpu.memory_space<vmem>>, vector<8x128xf32>,
    } else {
    }
    %c88_i32 = arith.constant 88 : i32
    %3 = arith.muli %arg1, %c88_i32 : i32
    %4 = tpu.iota {dimensions = array<i32: 1>} : vector<8x88xi32>
    %c0 = arith.constant 0 : index
    %c0_1 = arith.constant 0 : index
    %5 = vector.load %arg3[%c0, %c0_1] : memref<88x32xbf16, #tpu.memory_space<vmem>>, vector<88x32xbf16>
    %c0_2 = arith.constant 0 : index
    %c0_3 = arith.constant 0 : index
    %6 = vector.load %arg4[%c0_2, %c0_3] : memref<88x32xbf16, #tpu.memory_space<vmem>>, vector<88x32xbf16>
    %c0_4 = arith.constant 0 : index
    %c0_5 = arith.constant 0 : index
    %7 = vector.load %arg2[%c0_4, %c0_5] : memref<8x4xi32, #tpu.memory_space<vmem>>, vector<8x1xi32>
    %8 = vector.broadcast %3 : i32 to vector<8x1xi32>
    %9 = arith.subi %7, %8 : vector<8x1xi32>
    %10 = vector.broadcast %9 : vector<8x1xi32> to vector<8x88xi32>
    %11 = arith.cmpi eq, %4, %10 : vector<8x88xi32>
    %cst = arith.constant 1.000000e+00 : f32
    %cst_6 = arith.constant 0.000000e+00 : f32
    %12 = vector.broadcast %cst : f32 to vector<8x88xf32>
    %13 = vector.broadcast %cst_6 : f32 to vector<8x88xf32>
    %14 = arith.select %11, %12, %13 : vector<8x88xi1>, vector<8x88xf32>
    %15 = arith.truncf %14 : vector<8x88xf32> to vector<8x88xbf16>
    %cst_7 = arith.constant dense<0.000000e+00> : vector<8x32xf32>
    %16 = tpu.matmul %15, %5, %cst_7 {dimension_numbers = #tpu.dot_dimension_numbers<[1], [0], [0], [1], [0, 0, 1, 1], [], []>} : vector<8x88xbf16>, vector<88x32xbf16>, vector<8x32xf32> -> vector<8x32xf32>
    %cst_8 = arith.constant dense<0.000000e+00> : vector<8x32xf32>
    %17 = tpu.matmul %15, %6, %cst_8 {dimension_numbers = #tpu.dot_dimension_numbers<[1], [0], [0], [1], [0, 0, 1, 1], [], []>} : vector<8x88xbf16>, vector<88x32xbf16>, vector<8x32xf32> -> vector<8x32xf32>
    %18 = arith.addf %16, %17 : vector<8x32xf32>
    %c0_9 = arith.constant 0 : index
    %c1 = arith.constant 1 : index
    %19 = vector.load %arg2[%c0_9, %c1] : memref<8x4xi32, #tpu.memory_space<vmem>>, vector<8x1xi32>
    %20 = vector.broadcast %3 : i32 to vector<8x1xi32>
    %21 = arith.subi %19, %20 : vector<8x1xi32>
    %22 = vector.broadcast %21 : vector<8x1xi32> to vector<8x88xi32>
    %23 = arith.cmpi eq, %4, %22 : vector<8x88xi32>
    %cst_10 = arith.constant 1.000000e+00 : f32
    %cst_11 = arith.constant 0.000000e+00 : f32
    %24 = vector.broadcast %cst_10 : f32 to vector<8x88xf32>
    %25 = vector.broadcast %cst_11 : f32 to vector<8x88xf32>
    %26 = arith.select %23, %24, %25 : vector<8x88xi1>, vector<8x88xf32>
    %27 = arith.truncf %26 : vector<8x88xf32> to vector<8x88xbf16>
    %cst_12 = arith.constant dense<0.000000e+00> : vector<8x32xf32>
    %28 = tpu.matmul %27, %5, %cst_12 {dimension_numbers = #tpu.dot_dimension_numbers<[1], [0], [0], [1], [0, 0, 1, 1], [], []>} : vector<8x88xbf16>, vector<88x32xbf16>, vector<8x32xf32> -> vector<8x32xf32>
    %cst_13 = arith.constant dense<0.000000e+00> : vector<8x32xf32>
    %29 = tpu.matmul %27, %6, %cst_13 {dimension_numbers = #tpu.dot_dimension_numbers<[1], [0], [0], [1], [0, 0, 1, 1], [], []>} : vector<8x88xbf16>, vector<88x32xbf16>, vector<8x32xf32> -> vector<8x32xf32>
    %30 = arith.addf %28, %29 : vector<8x32xf32>
    %c0_14 = arith.constant 0 : index
    %c2 = arith.constant 2 : index
    %31 = vector.load %arg2[%c0_14, %c2] : memref<8x4xi32, #tpu.memory_space<vmem>>, vector<8x1xi32>
    %32 = vector.broadcast %3 : i32 to vector<8x1xi32>
    %33 = arith.subi %31, %32 : vector<8x1xi32>
    %34 = vector.broadcast %33 : vector<8x1xi32> to vector<8x88xi32>
    %35 = arith.cmpi eq, %4, %34 : vector<8x88xi32>
    %cst_15 = arith.constant 1.000000e+00 : f32
    %cst_16 = arith.constant 0.000000e+00 : f32
    %36 = vector.broadcast %cst_15 : f32 to vector<8x88xf32>
    %37 = vector.broadcast %cst_16 : f32 to vector<8x88xf32>
    %38 = arith.select %35, %36, %37 : vector<8x88xi1>, vector<8x88xf32>
    %39 = arith.truncf %38 : vector<8x88xf32> to vector<8x88xbf16>
    %cst_17 = arith.constant dense<0.000000e+00> : vector<8x32xf32>
    %40 = tpu.matmul %39, %5, %cst_17 {dimension_numbers = #tpu.dot_dimension_numbers<[1], [0], [0], [1], [0, 0, 1, 1], [], []>} : vector<8x88xbf16>, vector<88x32xbf16>, vector<8x32xf32> -> vector<8x32xf32>
    %cst_18 = arith.constant dense<0.000000e+00> : vector<8x32xf32>
    %41 = tpu.matmul %39, %6, %cst_18 {dimension_numbers = #tpu.dot_dimension_numbers<[1], [0], [0], [1], [0, 0, 1, 1], [], []>} : vector<8x88xbf16>, vector<88x32xbf16>, vector<8x32xf32> -> vector<8x32xf32>
    %42 = arith.addf %40, %41 : vector<8x32xf32>
    %c0_19 = arith.constant 0 : index
    %c3 = arith.constant 3 : index
    %43 = vector.load %arg2[%c0_19, %c3] : memref<8x4xi32, #tpu.memory_space<vmem>>, vector<8x1xi32>
    %44 = vector.broadcast %3 : i32 to vector<8x1xi32>
    %45 = arith.subi %43, %44 : vector<8x1xi32>
    %46 = vector.broadcast %45 : vector<8x1xi32> to vector<8x88xi32>
    %47 = arith.cmpi eq, %4, %46 : vector<8x88xi32>
    %cst_20 = arith.constant 1.000000e+00 : f32
    %cst_21 = arith.constant 0.000000e+00 : f32
    %48 = vector.broadcast %cst_20 : f32 to vector<8x88xf32>
    %49 = vector.broadcast %cst_21 : f32 to vector<8x88xf32>
    %50 = arith.select %47, %48, %49 : vector<8x88xi1>, vector<8x88xf32>
    %51 = arith.truncf %50 : vector<8x88xf32> to vector<8x88xbf16>
    %cst_22 = arith.constant dense<0.000000e+00> : vector<8x32xf32>
    %52 = tpu.matmul %51, %5, %cst_22 {dimension_numbers = #tpu.dot_dimension_numbers<[1], [0], [0], [1], [0, 0, 1, 1], [], []>} : vector<8x88xbf16>, vector<88x32xbf16>, vector<8x32xf32> -> vector<8x32xf32>
    %cst_23 = arith.constant dense<0.000000e+00> : vector<8x32xf32>
    %53 = tpu.matmul %51, %6, %cst_23 {dimension_numbers = #tpu.dot_dimension_numbers<[1], [0], [0], [1], [0, 0, 1, 1], [], []>} : vector<8x88xbf16>, vector<88x32xbf16>, vector<8x32xf32> -> vector<8x32xf32>
    %54 = arith.addf %52, %53 : vector<8x32xf32>
    %55 = tpu.concatenate %18, %30, %42, %54 in 1 : vector<8x32xf32>, vector<8x32xf32>, vector<8x32xf32>, vector<8x32xf32> -> vector<8x128xf32>
    %c0_24 = arith.constant 0 : index
    %c0_25 = arith.constant 0 : index
    %56 = vector.load %arg5[%c0_24, %c0_25] : memref<8x128xf32, #tpu.memory_space<vmem>>, vector<8x128xf32>
    %57 = arith.addf %56, %55 : vector<8x128xf32>
    %c0_26 = arith.constant 0 : index
    %c0_27 = arith.constant 0 : index
    %58 = vector.load %arg5[%c0_26, %c0_27] : memref<8x128xf32, #tpu.memory_space<vmem>>, vector<8x128xf32>
    tpu.vector_store %arg5[%c0_26, %c0_27], %57 {strides = array<i32>} : memref<8x128xf32, #tpu.memory_space<vmem>>, vector<8x128xf32>,
    return
  }
  func.func @transform_0(%arg0: i32, %arg1: i32) -> (i32, i32) {
    %c0_i32 = arith.constant 0 : i32
    %c0_i32_0 = arith.constant 0 : i32
    return %arg0, %c0_i32 : i32, i32
  }
  func.func @transform_1(%arg0: i32, %arg1: i32) -> (i32, i32) {
    %c0_i32 = arith.constant 0 : i32
    %c0_i32_0 = arith.constant 0 : i32
    return %arg1, %c0_i32 : i32, i32
  }
  func.func @transform_2(%arg0: i32, %arg1: i32) -> (i32, i32) {
    %c0_i32 = arith.constant 0 : i32
    %c0_i32_0 = arith.constant 0 : i32
    return %arg1, %c0_i32 : i32, i32
  }
  func.func @transform_3(%arg0: i32, %arg1: i32) -> (i32, i32) {
    %c0_i32 = arith.constant 0 : i32
    %c0_i32_0 = arith.constant 0 : i32
    return %arg0, %c0_i32 : i32, i32
  }
}

</mosaic_0001>

<bundles_post_ra>
// kernel: tpu_custom_call.1
= control target key start
LH: loop header
LB: loop body
LE: loop exit
PB: predicated region body
PF: predicated region fallthrough
CT: control target
= control target key end

     0   :  { %8 = vsyncpa [#allocation3], 0  ;;  %s992_s0 = inlined_call_operand.vmem [shape: s32[24,4], index: 0, kind: input, shape index: {}]   ;;  %s993_s1 = inlined_call_operand.vmem [shape: bf16[88,32], index: 1, kind: input, shape index: {}]   ;;  %s994_s2 = inlined_call_operand.vmem [shape: bf16[88,32], index: 2, kind: input, shape index: {}]   ;;  %s995_s3 = inlined_call_operand.hbm [shape: f32[24,128], index: 3, kind: output, shape index: {}]  }
   0x1   :  { %10 = vsyncpa [#allocation3 + $0x1], 0  ;;  %s851_s12 = smov 0   ;;  %s853_s13 = smov 0  }
   0x2   :  { %s855_s14 = smov 0   ;;  %s857_s15 = smov 0  }
   0x3   :  { %s859_s16 = smov 0   ;;  %s861_s17 = smov 0  }
   0x4 LB: > { %s604_s18 = sadd.s32 4294967295, %s821_s17   ;;  %s605_s19 = sadd.s32 4294967294, %s821_s17   ;;  %s821_s17 = sphi %s861_s17, %s16_s17   ;;  %s817_s16 = sphi %s859_s16, %s1002_s16   ;;  %s813_s15 = sphi %s857_s15, %s1001_s15   ;;  %s809_s14 = sphi %s855_s14, %s1000_s14   ;;  %s805_s13 = sphi %s853_s13, %s999_s13   ;;  %s801_s12 = sphi %s851_s12, %s998_s12  }
   0x5   : > { %s28_s20 = sadd.s32 1, %s817_s16  ;;  %s113_s21 = sadd.s32 1, %s809_s14 }
   0x6   : > { %p30_p0 = scmp.ge.s32.totalorder %s28_s20, 3  ;;  %p123_p1 = scmp.ne.s32.totalorder %s809_s14, %s805_s13 }
   0x7   : > { %p124_p2 = scmp.eq.s32.totalorder %s604_s18, 2  ;;  %p129_p3 = scmp.ne.s32.totalorder %s805_s13, %s801_s12 }
   0x8   : > { %s1004_s20 = smov (%p30_p0, %s28_s20), 0  ;;  %p130_p5 = scmp.eq.s32.totalorder %s605_s19, 2 }
   0x9   : > { %p891_p4 = por %p124_p2, %p123_p1  ;;  %s110_s23 = ssub.s32 %s817_s16, %s1004_s20 }
   0xa   : > { %p610_p6 = scmp.ge.s32.totalorder %s821_s17, 1  ;;  %p111_p7 = scmp.eq.s32.totalorder %s110_s23, 0 }
   0xb   : > { %p898_p8 = por %p130_p5, %p129_p3  ;;  %p173_p9 = scmp.lt.s32.totalorder %s821_s17, 4 }
   0xc   : > { %s904_s25 = scalar_select %p111_p7, %s809_s14, %s113_s21  }
   0xd   : > { %p174_p10 = pnand %p610_p6, %p173_p9 }
   0xe   : > { %p206_p11 = scmp.lt.s32.totalorder (!%p174_p10), %s813_s15, 2  ;;  %s828_s11 = smov (!%p174_p10), 32  }
   0xf   : > { %177 = sbr.rel (%p174_p10) target bundleno = 413 (0x19d), region = 32  ;;  %s829_s18 = smov (!%p174_p10), 96  }
  0x10   : > { %s830_s19 = smov (!%p174_p10), 64   ;;  %s203_s21 = sand.u32 (!%p174_p10), 1, %s805_s13  }
  0x11   : > { %s611_s23 = sshll.u32 (!%p174_p10), %s203_s21, 3  ;;  %s662_s26 = sshll.u32 (!%p174_p10), %s813_s15, 3 }
  0x12   : > { %s502_s29 = scalar_lea.hbm (!%p174_p10), %s995_s3, %s662_s26  ;;  %s763_s10 = scalar_lea.hbm (!%p174_p10), %s995_s3, 24 }
  0x13   : > { %s506_s5 = sshll.u32 (!%p174_p10), %s502_s29, 4  ;;  %s507_s5 = int_to_ptr.hbm [resolvable:$true] %s506_s5 }
  0x14   : > { %v823_v0 = vmov 1   ;;  %v824_v1 = vmov 3   ;;  %v252_v2 = vld [vmem:[%s994_s2 + $0x28] sm:$0xf]  ;;  %s207_s30 = scalar_select %p206_p11, %s813_s15, 2  ;;  %vm299_vm0 = vcmask 1043456   ;;  %v229_v23 = vlaneseq }
  0x15   : > { %738 = vset.pattern.permute.xlu0 %v823_v0  ;;  %740 = vset.pattern.permute.xlu1 %v824_v1  ;;  %v241_v3 = vld [vmem:[%s993_s1 + $0x28] sm:$0xf]  ;;  %v283_v4 = vunpack.c.l.b16 %v252_v2  ;;  %v674_v11 = vld [vmem:[%s994_s2 + $0x20] sm:$0xff]  ;;  %v673_v13 = vld [vmem:[%s994_s2 + $0x18] sm:$0xff]  ;;  %v825_v15 = vmov 0   ;;  %v826_v16 = vmov 2  }
  0x16   : > { %v337_v5 = vunpack.c.l.b16 %v241_v3  ;;  %s612_s4 = sshll.u32 %s207_s30, 3  ;;  %v669_v12 = vld [vmem:[%s993_s1 + $0x20] sm:$0xff]  ;;  %v668_v14 = vld [vmem:[%s993_s1 + $0x18] sm:$0xff]  ;;  %v672_v17 = vld [vmem:[%s994_s2 + $0x10] sm:$0xff]  ;;  %v230_v24 = vand.u32 127, %v229_v23  ;;  %v827_v26 = vmov 0.0  }
  0x17   : > { %v289_v6 = vpack.c.b16 %v283_v4, %v283_v4  ;;  %s209_s7 = scalar_lea.vmem %s992_s0, %s612_s4  ;;  %v667_v18 = vld [vmem:[%s993_s1 + $0x10] sm:$0xff]  ;;  %v671_v19 = vld [vmem:[%s994_s2 + $0x8] sm:$0xff]  ;;  %v670_v21 = vld [vmem:[%s994_s2] sm:$0xff]  ;;  %vm295_vm2 = vcmask 719872   ;;  %vm482_vm6 = vcmask 261120   ;;  %vm484_vm7 = vcmask 523264  }
  0x18   : > { %v343_v7 = vpack.c.b16 %v337_v5, %v337_v5  ;;  %v253_v8 = vld [vmem:[%s209_s7] sm:$0xff]  ;;  %v666_v20 = vld [vmem:[%s993_s1 + $0x8] sm:$0xff]  ;;  %vm486_vm8 = vcmask 785408   ;;  %s205_s30 = scalar_lea.vmem [#allocation2], %s611_s23  ;;  %s492_s15 = scalar_lea.sflag [#allocation3], %s203_s21 }
  0x19   : > { %v301_v9 = vsel %vm299_vm0, %v289_v6, 0  ;;  %366 = vperm.xlu0 %738, %v253_v8   ;;  %436 = vperm.xlu1 %740, %v253_v8   ;;  %v665_v22 = vld [vmem:[%s993_s1] sm:$0xff]  ;;  %s504_s4 = sshll.u32 %s205_s30, 4  ;;  %s757_s6 = sshra.s32 %s507_s5, 4  ;;  %s505_s4 = int_to_ptr.vmem [resolvable:$true] %s504_s4  ;;  %s758_s6 = int_to_ptr.hbm [resolvable:$true] %s757_s6 }
  0x1a   : > { %v350_v10 = vsel %vm299_vm0, %v343_v7, 0  ;;  %376 = vmatpush.bf16.msra.mxu2 %v301_v9  ;;  %305 = vmatpush.bf16.msra.mxu0 %v301_v9  ;;  %s759_s7 = scalar_lea.hbm %s758_s6, 8  ;;  %p764_p1 = scmp.lt.s32.totalorder %s758_s6, %s995_s3 }
  0x1b   : > { %389 = vmatpush.bf16.msra.mxu3 %v350_v10  ;;  %354 = vmatpush.bf16.msra.mxu1 %v350_v10  ;;  %p760_p12 = scmp.ne.s32.totalorder %s758_s6, %s759_s7  ;;  %p765_p2 = scmp.lt.s32.totalorder %s763_s10, %s759_s7 }
  0x1d   : > { %p761_p13 = pnand %p760_p12, %p891_p4  ;;  %p766_p3 = por %p765_p2, %p764_p1 }
  0x1e   : > { %377 = vmatpush.bf16.msra.mxu2 %v674_v11  ;;  %306 = vmatpush.bf16.msra.mxu0 %v674_v11 }
  0x1f   : > { %390 = vmatpush.bf16.msra.mxu3 %v669_v12  ;;  %355 = vmatpush.bf16.msra.mxu1 %v669_v12  ;;  %p762_p0 = pneg %p761_p13 }
  0x21   : > { %739 = vset.pattern.permute.xlu0 %v825_v15  ;;  %741 = vset.pattern.permute.xlu1 %v826_v16  ;;  %p767_p5 = pnand %p766_p3, %p762_p0 }
  0x22   : > { %257 = vperm.xlu0 %739, %v253_v8   ;;  %401 = vperm.xlu1 %741, %v253_v8  }
  0x23   : > { %378 = vmatpush.bf16.msra.mxu2 %v673_v13  ;;  %391 = vmatpush.bf16.msra.mxu3 %v668_v14 }
  0x24   : > { %307 = vmatpush.bf16.msra.mxu0 %v673_v13  ;;  %356 = vmatpush.bf16.msra.mxu1 %v668_v14 }
  0x27   : > { %379 = vmatpush.bf16.msra.mxu2 %v672_v17  ;;  %392 = vmatpush.bf16.msra.mxu3 %v667_v18 }
  0x28   : > { %308 = vmatpush.bf16.msra.mxu0 %v672_v17  ;;  %357 = vmatpush.bf16.msra.mxu1 %v667_v18 }
  0x2a   : > { %742 = vset.pattern.permute.xlu0 %v824_v1 }
  0x2b   : > { %380 = vmatpush.bf16.msra.mxu2 %v671_v19  ;;  %393 = vmatpush.bf16.msra.mxu3 %v666_v20 }
  0x2c   : > { %309 = vmatpush.bf16.msra.mxu0 %v671_v19  ;;  %358 = vmatpush.bf16.msra.mxu1 %v666_v20 }
  0x2f   : > { %381 = vmatpush.bf16.msra.mxu2 %v670_v21  ;;  %394 = vmatpush.bf16.msra.mxu3 %v665_v22 }
  0x30   : > { %310 = vmatpush.bf16.msra.mxu0 %v670_v21  ;;  %359 = vmatpush.bf16.msra.mxu1 %v665_v22 }
  0x33   : > { %446 = vmatpush.bf16.msrb.mxu2 %v301_v9  ;;  %459 = vmatpush.bf16.msrb.mxu3 %v350_v10 }
  0x34   : > { %411 = vmatpush.bf16.msrb.mxu0 %v301_v9  ;;  %424 = vmatpush.bf16.msrb.mxu1 %v350_v10 }
  0x37   : > { %447 = vmatpush.bf16.msrb.mxu2 %v674_v11  ;;  %460 = vmatpush.bf16.msrb.mxu3 %v669_v12 }
  0x38   : > { %412 = vmatpush.bf16.msrb.mxu0 %v674_v11  ;;  %425 = vmatpush.bf16.msrb.mxu1 %v669_v12 }
  0x3b   : > { %448 = vmatpush.bf16.msrb.mxu2 %v673_v13  ;;  %461 = vmatpush.bf16.msrb.mxu3 %v668_v14 }
  0x3c   : > { %413 = vmatpush.bf16.msrb.mxu0 %v673_v13  ;;  %426 = vmatpush.bf16.msrb.mxu1 %v668_v14 }
  0x3f   : > { %449 = vmatpush.bf16.msrb.mxu2 %v672_v17  ;;  %462 = vmatpush.bf16.msrb.mxu3 %v667_v18 }
  0x40   : > { %414 = vmatpush.bf16.msrb.mxu0 %v672_v17  ;;  %427 = vmatpush.bf16.msrb.mxu1 %v667_v18 }
  0x43   : > { %450 = vmatpush.bf16.msrb.mxu2 %v671_v19  ;;  %463 = vmatpush.bf16.msrb.mxu3 %v666_v20 }
  0x44   : > { %415 = vmatpush.bf16.msrb.mxu0 %v671_v19  ;;  %428 = vmatpush.bf16.msrb.mxu1 %v666_v20 }
  0x47   : > { %451 = vmatpush.bf16.msrb.mxu2 %v670_v21  ;;  %464 = vmatpush.bf16.msrb.mxu3 %v665_v22 }
  0x48   : > { %416 = vmatpush.bf16.msrb.mxu0 %v670_v21  ;;  %429 = vmatpush.bf16.msrb.mxu1 %v665_v22 }
  0x8b   : > { %v367_v25 = vpop.permute.xlu0 %366  ;;  %v437_v29 = vpop.permute.xlu1 %436 }
  0x8c   : > { %vm368_vm1 = vcmp.eq.s32.totalorder %v230_v24, %v367_v25  ;;  %vm438_vm4 = vcmp.eq.s32.totalorder %v230_v24, %v437_v29 }
  0x8d   : > { %v369_v27 = vsel %vm368_vm1, 1.0, %v827_v26  ;;  %v439_v33 = vsel %vm438_vm4, 1.0, %v827_v26 }
  0x8e   : > { %v370_v28 = vpack.c.bf16 %v369_v27, %v369_v27  ;;  %v440_v34 = vpack.c.bf16 %v439_v33, %v439_v33 }
  0x90   : > { %655 = vmatmul.msk.bf16.vlgmr.msra.gmra.mxu2 %vm295_vm2, %v370_v28  ;;  %656 = vmatmul.msk.bf16.vlgmr.msra.gmra.mxu3 %vm295_vm2, %v370_v28 }
  0x94   : > { %v258_v30 = vpop.permute.xlu0 %257  ;;  %v402_v35 = vpop.permute.xlu1 %401 }
  0x95   : > { %vm259_vm3 = vcmp.eq.s32.totalorder %v230_v24, %v258_v30  ;;  %vm403_vm5 = vcmp.eq.s32.totalorder %v230_v24, %v402_v35 }
  0x96   : > { %v260_v31 = vsel %vm259_vm3, 1.0, %v827_v26  ;;  %v404_v36 = vsel %vm403_vm5, 1.0, %v827_v26 }
  0x97   : > { %v261_v32 = vpack.c.bf16 %v260_v31, %v260_v31  ;;  %v405_v37 = vpack.c.bf16 %v404_v36, %v404_v36 }
  0x99   : > { %633 = vmatmul.msk.bf16.vlgmr.msra.gmra.mxu0 %vm295_vm2, %v261_v32  ;;  %654 = vmatmul.msk.bf16.vlgmr.msra.gmra.mxu1 %vm295_vm2, %v261_v32 }
  0xa0   : > { %659 = vmatmul.msk.bf16.vlgmr.msrb.gmra.mxu2 %vm295_vm2, %v440_v34  ;;  %660 = vmatmul.msk.bf16.vlgmr.msrb.gmra.mxu3 %vm295_vm2, %v440_v34 }
  0xa9   : > { %657 = vmatmul.msk.bf16.vlgmr.msrb.gmra.mxu0 %vm295_vm2, %v405_v37  ;;  %658 = vmatmul.msk.bf16.vlgmr.msrb.gmra.mxu1 %vm295_vm2, %v405_v37 }
 0x113   : > { %v383_v38 = vpop.f32.mrf.mxu2  ;;  %v396_v39 = vpop.f32.mrf.mxu3 }
 0x114   : > { %v397_v40 = vadd.f32 %v396_v39, %v383_v38 }
 0x116   : > { %471 = vrot.lane.b32.xlu2 %v397_v40, %s828_s11  ;;  %v312_v41 = vpop.f32.mrf.mxu0  ;;  %v361_v42 = vpop.f32.mrf.mxu1 }
 0x117   : > { %v362_v43 = vadd.f32 %v361_v42, %v312_v41 }
 0x11b   : > { %v385_v44 = vpop.f32.mrf.mxu2  ;;  %v398_v45 = vpop.f32.mrf.mxu3 }
 0x11e   : > { %v314_v46 = vpop.f32.mrf.mxu0  ;;  %v363_v47 = vpop.f32.mrf.mxu1 }
 0x123   : > { %v453_v48 = vpop.f32.mrf.mxu2  ;;  %v466_v49 = vpop.f32.mrf.mxu3 }
 0x124   : > { %v467_v50 = vadd.f32 %v466_v49, %v453_v48 }
 0x126   : > { %479 = vrot.lane.b32.xlu1 %v467_v50, %s829_s18  ;;  %v418_v51 = vpop.f32.mrf.mxu0  ;;  %v431_v52 = vpop.f32.mrf.mxu1 }
 0x127   : > { %v432_v53 = vadd.f32 %v431_v52, %v418_v51 }
 0x129   : > { %475 = vrot.lane.b32.xlu2 %v432_v53, %s830_s19 }
 0x12b   : > { %v455_v54 = vpop.f32.mrf.mxu2  ;;  %v468_v55 = vpop.f32.mrf.mxu3 }
 0x12e   : > { %v420_v56 = vpop.f32.mrf.mxu0  ;;  %v433_v57 = vpop.f32.mrf.mxu1 }
 0x170   : > { %v472_v58 = vpop.permute.xlu2 %471 }
 0x171   : > { %v483_v60 = vsel %vm482_vm6, %v362_v43, %v472_v58 }
 0x183   : > { %v476_v59 = vpop.permute.xlu2 %475 }
 0x184   : > { %v485_v61 = vsel %vm484_vm7, %v483_v60, %v476_v59 }
 0x198   : > { %v480_v62 = vpop.permute.xlu1 %479 }
 0x199   : > { %v487_v63 = vsel %vm486_vm8, %v485_v61, %v480_v62 }
 0x19a   : > { %490 = vst [vmem:[%s205_s30] sm:$0xff] %v487_v63 }
 0x19b   : > { %770 = shalt.err (!%p767_p5)
}
 0x19c   : > { %675 = dma.vmem_to_hbm [thread:$0]  (%p891_p4), %s505_s4, 128, %s507_s5, %s492_s15  }
 0x19d PF: > { %p681_p6 = scmp.ge.s32.totalorder %s821_s17, 2  ;;  %s518_s19 = sand.u32 1, %s801_s12  }
 0x19e   : > { %s519_s21 = scalar_lea.sflag [#allocation3], %s518_s19 }
 0x19f   : > { %p678_p7 = pnand %p681_p6, %p898_p8 }
 0x1a1   : > { %p679_p9 = pneg %p678_p7 }
 0x1a3   : > { %796 = dma.done.wait (%p679_p9), %s519_s21, 128  }
 0x1a4   : > { %798 = vsyncadd (%p679_p9), %s519_s21, 4294967168  ;;  %s16_s17 = sadd.s32 1, %s821_s17   ;;  %s998_s12 = smov %s805_s13 }
 0x1a5   : > { %p13_p10 = scmp.ge.s32.totalorder %s16_s17, 5   ;;  %s999_s13 = smov %s809_s14 }
 0x1a6   : > { %s1000_s14 = smov %s904_s25  ;;  %s1001_s15 = smov %s817_s16 }
 0x1a7   : > { %s1002_s16 = smov %s1004_s20  ;;  %15 = sbr.rel (!%p13_p10) target bundleno = 4 (0x4), region = 77 }
 0x1ac   :  { %525 = vsyncpa [#allocation3], 1 }
 0x1ad   :  { %527 = vsyncpa [#allocation3 + $0x1], 1 }

</bundles_post_ra>
